<compile_context>
chip_gen: v7x
topology: tpu7x:2x2x1
jax: 0.10.0
libtpu: 0.0.40
codegen_flags: <defaults>
</compile_context>

<pallas_src>
import functools

import jax
import jax.numpy as jnp
from jax.experimental import pallas as pl
from jax.experimental.pallas import tpu as pltpu

LEAK = 0.2
BN_EPS = 1e-5
_TM_TARGET = 256                      # row-tile target (multiple of 16 for bf16)
_VMEM_LIMIT = 32 * 1024 * 1024        # fits the v5e scoped default comfortably


def _round_up(x, m):
    return (x + m - 1) // m * m


# ----------------------------- Pallas kernels ------------------------------

def _mm_kernel(x_ref, w_ref, o_ref, acc_ref, *, apply_lrelu, slope):
    """Tiled conv-as-matmul; optional fused LeakyReLU epilogue.

    grid = (m_tiles, k_tiles); acc_ref is a (TM, Npad) f32 VMEM accumulator.
    """
    k = pl.program_id(1)

    @pl.when(k == 0)
    def _():
        acc_ref[...] = jnp.zeros_like(acc_ref)

    acc_ref[...] += jnp.dot(x_ref[...], w_ref[...],
                            preferred_element_type=jnp.float32)

    @pl.when(k == pl.num_programs(1) - 1)
    def _():
        y = acc_ref[...]
        if apply_lrelu:
            y = jnp.where(y >= 0, y, slope * y)
        o_ref[...] = y.astype(o_ref.dtype)


def _mm_bn_stats_kernel(x_ref, w_ref, o_ref, sum_ref, sq_ref, acc_ref):
    """Tiled matmul that also accumulates per-channel sum / sum-of-squares.

    sum_ref / sq_ref have a constant block index across the whole grid, so they
    stay resident in VMEM and accumulate over every M tile (grid m axis must be
    'arbitrary').  Padded (all-zero) rows/channels contribute 0 to both sums.
    """
    m = pl.program_id(0)
    k = pl.program_id(1)

    @pl.when((m == 0) & (k == 0))
    def _():
        sum_ref[...] = jnp.zeros_like(sum_ref)
        sq_ref[...] = jnp.zeros_like(sq_ref)

    @pl.when(k == 0)
    def _():
        acc_ref[...] = jnp.zeros_like(acc_ref)

    acc_ref[...] += jnp.dot(x_ref[...], w_ref[...],
                            preferred_element_type=jnp.float32)

    @pl.when(k == pl.num_programs(1) - 1)
    def _():
        y = acc_ref[...]
        o_ref[...] = y.astype(o_ref.dtype)
        sum_ref[...] += jnp.sum(y, axis=0, keepdims=True)
        sq_ref[...] += jnp.sum(y * y, axis=0, keepdims=True)


def _bn_apply_kernel(x_ref, sum_ref, sq_ref, g_ref, b_ref, o_ref, *,
                     count, eps, slope):
    """BatchNorm (train-mode batch stats) + LeakyReLU on a (TM, Cpad) tile."""
    inv_n = 1.0 / count
    mean = sum_ref[...] * inv_n
    var = jnp.maximum(sq_ref[...] * inv_n - mean * mean, 0.0)
    scale = jax.lax.rsqrt(var + eps) * g_ref[...]
    y = (x_ref[...] - mean) * scale + b_ref[...]
    o_ref[...] = jnp.where(y >= 0, y, slope * y).astype(o_ref.dtype)


def _linear_kernel(x_ref, w_ref, b_ref, o_ref):
    """nn.Linear head (matmul + bias), lane-padded output."""
    acc = jnp.dot(x_ref[...], w_ref[...], preferred_element_type=jnp.float32)
    o_ref[...] = (acc + b_ref[...]).astype(o_ref.dtype)


# ----------------------------- kernel wrappers ------------------------------

def _row_tiling(m):
    """Pad M to 16 (bf16 sublane quantum) and pick a TM that divides it."""
    m_pad = _round_up(m, 16)
    if m_pad <= _TM_TARGET:
        return m_pad, m_pad
    m_pad = _round_up(m, _TM_TARGET)
    return m_pad, _TM_TARGET


def _k_tiling(k):
    """Largest TK in {512, 256, 128} dividing K, else a single full-K block."""
    for t in (512, 256, 128):
        if k % t == 0:
            return t
    return k


def _tiled_matmul(x, wmat, *, epilogue):
    """x: (M, K) bf16 patches.  wmat: (K, Npad) bf16, Npad % 128 == 0.

    epilogue in {"none", "lrelu", "bn_stats"}.  Returns (Mpad, Npad) f32
    (plus (1, Npad) sum and sum-of-squares outputs for "bn_stats").
    """
    m, k_dim = x.shape
    k2, n_pad = wmat.shape
    assert k_dim == k2 and n_pad % 128 == 0
    m_pad, tm = _row_tiling(m)
    tk = _k_tiling(k_dim)
    gm, gk = m_pad // tm, k_dim // tk
    if m_pad != m:
        x = jnp.pad(x, ((0, m_pad - m), (0, 0)))

    x_spec = pl.BlockSpec((tm, tk), lambda i, j: (i, j))
    w_spec = pl.BlockSpec((tk, n_pad), lambda i, j: (j, 0))
    o_spec = pl.BlockSpec((tm, n_pad), lambda i, j: (i, 0))
    vec_spec = pl.BlockSpec((1, n_pad), lambda i, j: (0, 0))

    cost = pl.CostEstimate(
        flops=2 * m_pad * k_dim * n_pad,
        transcendentals=0,
        bytes_accessed=(m_pad * k_dim + gm * k_dim * n_pad) * 2
        + m_pad * n_pad * 4)

    if epilogue == "bn_stats":
        kernel = _mm_bn_stats_kernel
        out_shape = (jax.ShapeDtypeStruct((m_pad, n_pad), jnp.float32),
                     jax.ShapeDtypeStruct((1, n_pad), jnp.float32),
                     jax.ShapeDtypeStruct((1, n_pad), jnp.float32))
        out_specs = [o_spec, vec_spec, vec_spec]
        dims = ("arbitrary", "arbitrary")   # stats accumulate across m tiles
    else:
        kernel = functools.partial(_mm_kernel,
                                   apply_lrelu=(epilogue == "lrelu"),
                                   slope=LEAK)
        out_shape = jax.ShapeDtypeStruct((m_pad, n_pad), jnp.float32)
        out_specs = o_spec
        dims = ("parallel", "arbitrary")

    return pl.pallas_call(
        kernel,
        out_shape=out_shape,
        grid=(gm, gk),
        in_specs=[x_spec, w_spec],
        out_specs=out_specs,
        scratch_shapes=[pltpu.VMEM((tm, n_pad), jnp.float32)],
        compiler_params=pltpu.CompilerParams(
            dimension_semantics=dims, vmem_limit_bytes=_VMEM_LIMIT),
        cost_estimate=cost,
    )(x, wmat)


def _bn_apply(x_pad, ssum, ssq, gamma_pad, beta_pad, *, count):
    """Apply BN (stats from the conv kernel) + LeakyReLU, tiled over rows."""
    m_pad, n_pad = x_pad.shape
    tm = m_pad if m_pad <= _TM_TARGET else _TM_TARGET
    assert m_pad % tm == 0
    row_spec = pl.BlockSpec((tm, n_pad), lambda i: (i, 0))
    vec_spec = pl.BlockSpec((1, n_pad), lambda i: (0, 0))
    return pl.pallas_call(
        functools.partial(_bn_apply_kernel, count=float(count), eps=BN_EPS,
                          slope=LEAK),
        out_shape=jax.ShapeDtypeStruct((m_pad, n_pad), jnp.float32),
        grid=(m_pad // tm,),
        in_specs=[row_spec, vec_spec, vec_spec, vec_spec, vec_spec],
        out_specs=row_spec,
        compiler_params=pltpu.CompilerParams(
            dimension_semantics=("parallel",), vmem_limit_bytes=_VMEM_LIMIT),
    )(x_pad, ssum, ssq, gamma_pad, beta_pad)


def _linear(x, wmat_pad, b_pad, out_features):
    """x: (N, F) f32; wmat_pad: (F, 128) bf16; b_pad: (1, 128) f32."""
    n, f = x.shape
    n_pad_cols = wmat_pad.shape[1]
    m_pad = _round_up(n, 16)
    xp = jnp.pad(x.astype(jnp.bfloat16), ((0, m_pad - n), (0, 0)))
    out = pl.pallas_call(
        _linear_kernel,
        out_shape=jax.ShapeDtypeStruct((m_pad, n_pad_cols), jnp.float32),
        grid=(1,),
        in_specs=[pl.BlockSpec((m_pad, f), lambda i: (0, 0)),
                  pl.BlockSpec((f, n_pad_cols), lambda i: (0, 0)),
                  pl.BlockSpec((1, n_pad_cols), lambda i: (0, 0))],
        out_specs=pl.BlockSpec((m_pad, n_pad_cols), lambda i: (0, 0)),
        compiler_params=pltpu.CompilerParams(
            dimension_semantics=("arbitrary",), vmem_limit_bytes=_VMEM_LIMIT),
    )(xp, wmat_pad, b_pad)
    return out[:n, :out_features]


# ----------------------------- conv glue (im2col) ---------------------------

def _im2col_nhwc(x, k, stride, pad):
    """x: (N, H, W, C) f32 -> bf16 patches (N*Ho*Wo, k*k*C), features ordered
    (kh, kw, c) to match the packed weights."""
    x = x.astype(jnp.bfloat16)
    n, h, w, c = x.shape
    if pad > 0:
        x = jnp.pad(x, ((0, 0), (pad, pad), (pad, pad), (0, 0)))
    hp, wp = h + 2 * pad, w + 2 * pad
    ho = (hp - k) // stride + 1
    wo = (wp - k) // stride + 1
    cols = []
    for i in range(k):
        for j in range(k):
            cols.append(x[:, i:i + (ho - 1) * stride + 1:stride,
                          j:j + (wo - 1) * stride + 1:stride, :])
    p = jnp.stack(cols, axis=3)                       # (N, Ho, Wo, k*k, C)
    return p.reshape(n * ho * wo, k * k * c), ho, wo


def _conv_lrelu(x_nhwc, pw, stride, pad):
    patches, ho, wo = _im2col_nhwc(x_nhwc, pw["k"], stride, pad)
    m = patches.shape[0]
    out = _tiled_matmul(patches, pw["wmat"], epilogue="lrelu")
    return out[:m, :pw["cout"]].reshape(x_nhwc.shape[0], ho, wo, pw["cout"])


def _conv_plain(x_nhwc, pw, stride, pad):
    patches, ho, wo = _im2col_nhwc(x_nhwc, pw["k"], stride, pad)
    m = patches.shape[0]
    out = _tiled_matmul(patches, pw["wmat"], epilogue="none")
    return out[:m, :pw["cout"]].reshape(x_nhwc.shape[0], ho, wo, pw["cout"])


def _conv_bn_lrelu(x_nhwc, blk, stride, pad):
    pw = blk["conv"]
    patches, ho, wo = _im2col_nhwc(x_nhwc, pw["k"], stride, pad)
    m = patches.shape[0]
    out_pad, ssum, ssq = _tiled_matmul(patches, pw["wmat"], epilogue="bn_stats")
    y = _bn_apply(out_pad, ssum, ssq, blk["gamma"], blk["beta"], count=m)
    return y[:m, :pw["cout"]].reshape(x_nhwc.shape[0], ho, wo, pw["cout"])


# ------------------------- parameters & packing ------------------------------

def init_params(key, img_size, img_ratio, num_img_channels,
                num_feature_vec_channels, base):
    """Deterministic DCGAN-style init mirroring the torch module's shapes."""
    max_factor = img_size // 4
    keys = iter(jax.random.split(key, 32))

    def conv_w(k, cout, cin):
        return 0.02 * jax.random.normal(k, (cout, cin, 4, 4), jnp.float32)

    params = {
        "in_img_w": conv_w(next(keys), base, num_img_channels),
        "in_lab_w": conv_w(next(keys), base, num_feature_vec_channels),
        "blocks": [],
    }
    factor = 2
    while factor < max_factor:
        cin, cout = base * factor, base * factor * 2
        params["blocks"].append(dict(
            w=conv_w(next(keys), cout, cin),
            gamma=1.0 + 0.02 * jax.random.normal(next(keys), (cout,),
                                                 jnp.float32),
            beta=jnp.zeros((cout,), jnp.float32)))
        factor *= 2
    params["out_w"] = conv_w(next(keys), 1, base * factor)
    if img_ratio > 1:
        params["lin_w"] = 0.02 * jax.random.normal(next(keys), (1, img_ratio),
                                                   jnp.float32)
        params["lin_b"] = jnp.zeros((1,), jnp.float32)
    return params


def _pack_conv(w):
    """(Cout, Cin, k, k) f32 -> {(k*k*Cin, Cpad) bf16, cout, k}.  Cpad % 128 == 0,
    feature (row) order is (kh, kw, cin) to match _im2col_nhwc."""
    cout, cin, kh, kw = w.shape
    cpad = _round_up(cout, 128)
    wm = jnp.transpose(w, (2, 3, 1, 0)).reshape(kh * kw * cin, cout)
    wm = jnp.pad(wm, ((0, 0), (0, cpad - cout))).astype(jnp.bfloat16)
    return {"wmat": wm, "cout": cout, "k": kh}


def _pack_vec(v, pad_value=0.0):
    c = v.shape[0]
    cpad = _round_up(c, 128)
    return jnp.pad(v.astype(jnp.float32), (0, cpad - c),
                   constant_values=pad_value).reshape(1, cpad)


def pack_params(params, img_ratio):
    packed = {
        "in_img": _pack_conv(params["in_img_w"]),
        "in_lab": _pack_conv(params["in_lab_w"]),
        "blocks": [dict(conv=_pack_conv(b["w"]),
                        gamma=_pack_vec(b["gamma"], 1.0),
                        beta=_pack_vec(b["beta"], 0.0))
                   for b in params["blocks"]],
        "out": _pack_conv(params["out_w"]),
    }
    if img_ratio > 1:
        in_f = params["lin_w"].shape[1]
        packed["lin_w"] = jnp.pad(params["lin_w"].T,
                                  ((0, 0), (0, 127))).astype(jnp.bfloat16)
        packed["lin_b"] = jnp.pad(params["lin_b"].reshape(1, 1),
                                  ((0, 0), (0, 127))).astype(jnp.float32)
        packed["lin_in_f"] = in_f
    return packed


# --------------------------------- forward -----------------------------------

def discriminator_forward(packed, image, label, img_ratio):
    """image, label: NCHW f32 (PyTorch convention).  Returns NCHW (N,1,1,1) or
    (N, 1) when img_ratio > 1 (Linear head)."""
    img = jnp.transpose(image, (0, 2, 3, 1))          # one-time NCHW -> NHWC
    lab = jnp.transpose(label, (0, 2, 3, 1))
    a = _conv_lrelu(img, packed["in_img"], stride=2, pad=1)
    b = _conv_lrelu(lab, packed["in_lab"], stride=2, pad=1)
    x = jnp.concatenate([a, b], axis=-1)              # channel (last-dim) cat
    for blk in packed["blocks"]:
        x = _conv_bn_lrelu(x, blk, stride=2, pad=1)
    y = _conv_plain(x, packed["out"], stride=1, pad=0)  # (N, Ho, Wo, 1)
    if img_ratio > 1:
        n = y.shape[0]
        return _linear(y.reshape(n, -1), packed["lin_w"], packed["lin_b"], 1)
    return jnp.transpose(y, (0, 3, 1, 2))             # back to NCHW


# ----------------------------- pure-JAX reference ---------------------------

def _ref_forward(params, image, label, img_ratio):
    def conv(x, w, s, p):
        return jax.lax.conv_general_dilated(
            x, w, (s, s), [(p, p), (p, p)],
            dimension_numbers=("NCHW", "OIHW", "NCHW"))

    def lrelu(x):
        return jnp.where(x >= 0, x, LEAK * x)

    a = lrelu(conv(image, params["in_img_w"], 2, 1))
    b = lrelu(conv(label, params["in_lab_w"], 2, 1))
    x = jnp.concatenate([a, b], axis=1)
    for blk in params["blocks"]:
        x = conv(x, blk["w"], 2, 1)
        mean = x.mean(axis=(0, 2, 3), keepdims=True)
        var = ((x - mean) ** 2).mean(axis=(0, 2, 3), keepdims=True)
        x = (x - mean) * jax.lax.rsqrt(var + BN_EPS)
        x = x * blk["gamma"].reshape(1, -1, 1, 1) + blk["beta"].reshape(1, -1, 1, 1)
        x = lrelu(x)
    x = conv(x, params["out_w"], 1, 0)
    if img_ratio > 1:
        x = x.reshape(x.shape[0], -1) @ params["lin_w"].T + params["lin_b"]
    return x


# ----------------------------------- main ------------------------------------

if __name__ == "__main__":
    # Small config: img_size=16 -> max_factor=4 -> one _Block; img_ratio=1 ->
    # output head is the single 4x4 valid conv producing (N, 1, 1, 1).
    img_size, img_ratio = 16, 1
    num_img_channels, num_feature_vec_channels, base = 3, 4, 8

    key = jax.random.PRNGKey(0)
    kp, kim, klab = jax.random.split(key, 3)
    params = init_params(kp, img_size, img_ratio, num_img_channels,
                         num_feature_vec_channels, base)
    packed = pack_params(params, img_ratio)

    image = jax.random.normal(kim, (2, num_img_channels, img_size,
                                    img_size * img_ratio), jnp.float32)
    label = jax.random.normal(klab, (2, num_feature_vec_channels, img_size,
                                     img_size * img_ratio), jnp.float32)

    # packed weights (and their static metadata) are closed over, so only the
    # image/label tensors are traced arguments.
    fwd = jax.jit(lambda i, l: discriminator_forward(packed, i, l, img_ratio))
    out = jax.block_until_ready(fwd(image, label))

    ref = _ref_forward(params, image, label, img_ratio)
    assert out.shape == (2, 1, 1, 1), out.shape
    assert jnp.allclose(out, ref, rtol=5e-2, atol=5e-2), (out, ref)
    print("KERNEL_OK")
</pallas_src>

<mosaic_0001>
module attributes {stable_mosaic.version = 11 : i64} {
  func.func @_mm_kernel(%arg0: i32, %arg1: i32, %arg2: memref<128x64xbf16, #tpu.memory_space<vmem>>, %arg3: memref<64x128xbf16, #tpu.memory_space<vmem>>, %arg4: memref<128x128xf32, #tpu.memory_space<vmem>>, %arg5: memref<128x128xf32, #tpu.memory_space<vmem>>) attributes {dimension_semantics = [#tpu.dimension_semantics<parallel>, #tpu.dimension_semantics<arbitrary>], iteration_bounds = array<i64: 1, 1>, scalar_prefetch = 0 : i64, scratch_operands = 1 : i64, tpu.core_type = #tpu.core_type<tc>, window_params = [{transform_indices = @transform_0, window_bounds = array<i64: 128, 64>}, {transform_indices = @transform_1, window_bounds = array<i64: 64, 128>}, {transform_indices = @transform_2, window_bounds = array<i64: 128, 128>}]} {
    %c0_i32 = arith.constant 0 : i32
    %0 = arith.cmpi eq, %arg1, %c0_i32 : i32
    %1 = arith.extui %0 : i1 to i32
    %c0_i32_0 = arith.constant 0 : i32
    %2 = arith.cmpi ne, %1, %c0_i32_0 : i32
    scf.if %2 {
      %cst_10 = arith.constant 0.000000e+00 : f32
      %12 = vector.broadcast %cst_10 : f32 to vector<128x128xf32>
      %c0_11 = arith.constant 0 : index
      %c0_12 = arith.constant 0 : index
      %13 = vector.load %arg5[%c0_11, %c0_12] : memref<128x128xf32, #tpu.memory_space<vmem>>, vector<128x128xf32>
      tpu.vector_store %arg5[%c0_11, %c0_12], %12 {strides = array<i32>} : memref<128x128xf32, #tpu.memory_space<vmem>>, vector<128x128xf32>,
    } else {
    }
    %c0 = arith.constant 0 : index
    %c0_1 = arith.constant 0 : index
    %3 = vector.load %arg5[%c0, %c0_1] : memref<128x128xf32, #tpu.memory_space<vmem>>, vector<128x128xf32>
    %c0_2 = arith.constant 0 : index
    %c0_3 = arith.constant 0 : index
    %4 = vector.load %arg2[%c0_2, %c0_3] : memref<128x64xbf16, #tpu.memory_space<vmem>>, vector<128x64xbf16>
    %c0_4 = arith.constant 0 : index
    %c0_5 = arith.constant 0 : index
    %5 = vector.load %arg3[%c0_4, %c0_5] : memref<64x128xbf16, #tpu.memory_space<vmem>>, vector<64x128xbf16>
    %cst = arith.constant dense<0.000000e+00> : vector<128x128xf32>
    %6 = tpu.matmul %4, %5, %cst {dimension_numbers = #tpu.dot_dimension_numbers<[1], [0], [0], [1], [0, 0, 1, 1], [], []>} : vector<128x64xbf16>, vector<64x128xbf16>, vector<128x128xf32> -> vector<128x128xf32>
    %7 = arith.addf %3, %6 : vector<128x128xf32>
    %c0_6 = arith.constant 0 : index
    %c0_7 = arith.constant 0 : index
    %8 = vector.load %arg5[%c0_6, %c0_7] : memref<128x128xf32, #tpu.memory_space<vmem>>, vector<128x128xf32>
    tpu.vector_store %arg5[%c0_6, %c0_7], %7 {strides = array<i32>} : memref<128x128xf32, #tpu.memory_space<vmem>>, vector<128x128xf32>,
    %c0_i32_8 = arith.constant 0 : i32
    %9 = arith.cmpi eq, %arg1, %c0_i32_8 : i32
    %10 = arith.extui %9 : i1 to i32
    %c0_i32_9 = arith.constant 0 : i32
    %11 = arith.cmpi ne, %10, %c0_i32_9 : i32
    scf.if %11 {
      %c0_10 = arith.constant 0 : index
      %c0_11 = arith.constant 0 : index
      %12 = vector.load %arg5[%c0_10, %c0_11] : memref<128x128xf32, #tpu.memory_space<vmem>>, vector<128x128xf32>
      %cst_12 = arith.constant 0.000000e+00 : f32
      %13 = vector.broadcast %cst_12 : f32 to vector<128x128xf32>
      %14 = arith.cmpf oge, %12, %13 : vector<128x128xf32>
      %cst_13 = arith.constant 2.000000e-01 : f32
      %15 = vector.broadcast %cst_13 : f32 to vector<128x128xf32>
      %16 = arith.mulf %15, %12 : vector<128x128xf32>
      %17 = arith.select %14, %12, %16 : vector<128x128xi1>, vector<128x128xf32>
      %c0_14 = arith.constant 0 : index
      %c0_15 = arith.constant 0 : index
      %18 = vector.load %arg4[%c0_14, %c0_15] : memref<128x128xf32, #tpu.memory_space<vmem>>, vector<128x128xf32>
      tpu.vector_store %arg4[%c0_14, %c0_15], %17 {strides = array<i32>} : memref<128x128xf32, #tpu.memory_space<vmem>>, vector<128x128xf32>,
    } else {
    }
    return
  }
  func.func @transform_0(%arg0: i32, %arg1: i32) -> (i32, i32) {
    %c0_i32 = arith.constant 0 : i32
    return %arg0, %arg1 : i32, i32
  }
  func.func @transform_1(%arg0: i32, %arg1: i32) -> (i32, i32) {
    %c0_i32 = arith.constant 0 : i32
    %c0_i32_0 = arith.constant 0 : i32
    return %arg1, %c0_i32 : i32, i32
  }
  func.func @transform_2(%arg0: i32, %arg1: i32) -> (i32, i32) {
    %c0_i32 = arith.constant 0 : i32
    %c0_i32_0 = arith.constant 0 : i32
    return %arg0, %c0_i32 : i32, i32
  }
}

module attributes {stable_mosaic.version = 11 : i64} {
  func.func @_mm_kernel(%arg0: i32, %arg1: i32, %arg2: memref<128x48xbf16, #tpu.memory_space<vmem>>, %arg3: memref<48x128xbf16, #tpu.memory_space<vmem>>, %arg4: memref<128x128xf32, #tpu.memory_space<vmem>>, %arg5: memref<128x128xf32, #tpu.memory_space<vmem>>) attributes {dimension_semantics = [#tpu.dimension_semantics<parallel>, #tpu.dimension_semantics<arbitrary>], iteration_bounds = array<i64: 1, 1>, scalar_prefetch = 0 : i64, scratch_operands = 1 : i64, tpu.core_type = #tpu.core_type<tc>, window_params = [{transform_indices = @transform_0, window_bounds = array<i64: 128, 48>}, {transform_indices = @transform_1, window_bounds = array<i64: 48, 128>}, {transform_indices = @transform_2, window_bounds = array<i64: 128, 128>}]} {
    %c0_i32 = arith.constant 0 : i32
    %0 = arith.cmpi eq, %arg1, %c0_i32 : i32
    %1 = arith.extui %0 : i1 to i32
    %c0_i32_0 = arith.constant 0 : i32
    %2 = arith.cmpi ne, %1, %c0_i32_0 : i32
    scf.if %2 {
      %cst_10 = arith.constant 0.000000e+00 : f32
      %12 = vector.broadcast %cst_10 : f32 to vector<128x128xf32>
      %c0_11 = arith.constant 0 : index
      %c0_12 = arith.constant 0 : index
      %13 = vector.load %arg5[%c0_11, %c0_12] : memref<128x128xf32, #tpu.memory_space<vmem>>, vector<128x128xf32>
      tpu.vector_store %arg5[%c0_11, %c0_12], %12 {strides = array<i32>} : memref<128x128xf32, #tpu.memory_space<vmem>>, vector<128x128xf32>,
    } else {
    }
    %c0 = arith.constant 0 : index
    %c0_1 = arith.constant 0 : index
    %3 = vector.load %arg5[%c0, %c0_1] : memref<128x128xf32, #tpu.memory_space<vmem>>, vector<128x128xf32>
    %c0_2 = arith.constant 0 : index
    %c0_3 = arith.constant 0 : index
    %4 = vector.load %arg2[%c0_2, %c0_3] : memref<128x48xbf16, #tpu.memory_space<vmem>>, vector<128x48xbf16>
    %c0_4 = arith.constant 0 : index
    %c0_5 = arith.constant 0 : index
    %5 = vector.load %arg3[%c0_4, %c0_5] : memref<48x128xbf16, #tpu.memory_space<vmem>>, vector<48x128xbf16>
    %cst = arith.constant dense<0.000000e+00> : vector<128x128xf32>
    %6 = tpu.matmul %4, %5, %cst {dimension_numbers = #tpu.dot_dimension_numbers<[1], [0], [0], [1], [0, 0, 1, 1], [], []>} : vector<128x48xbf16>, vector<48x128xbf16>, vector<128x128xf32> -> vector<128x128xf32>
    %7 = arith.addf %3, %6 : vector<128x128xf32>
    %c0_6 = arith.constant 0 : index
    %c0_7 = arith.constant 0 : index
    %8 = vector.load %arg5[%c0_6, %c0_7] : memref<128x128xf32, #tpu.memory_space<vmem>>, vector<128x128xf32>
    tpu.vector_store %arg5[%c0_6, %c0_7], %7 {strides = array<i32>} : memref<128x128xf32, #tpu.memory_space<vmem>>, vector<128x128xf32>,
    %c0_i32_8 = arith.constant 0 : i32
    %9 = arith.cmpi eq, %arg1, %c0_i32_8 : i32
    %10 = arith.extui %9 : i1 to i32
    %c0_i32_9 = arith.constant 0 : i32
    %11 = arith.cmpi ne, %10, %c0_i32_9 : i32
    scf.if %11 {
      %c0_10 = arith.constant 0 : index
      %c0_11 = arith.constant 0 : index
      %12 = vector.load %arg5[%c0_10, %c0_11] : memref<128x128xf32, #tpu.memory_space<vmem>>, vector<128x128xf32>
      %cst_12 = arith.constant 0.000000e+00 : f32
      %13 = vector.broadcast %cst_12 : f32 to vector<128x128xf32>
      %14 = arith.cmpf oge, %12, %13 : vector<128x128xf32>
      %cst_13 = arith.constant 2.000000e-01 : f32
      %15 = vector.broadcast %cst_13 : f32 to vector<128x128xf32>
      %16 = arith.mulf %15, %12 : vector<128x128xf32>
      %17 = arith.select %14, %12, %16 : vector<128x128xi1>, vector<128x128xf32>
      %c0_14 = arith.constant 0 : index
      %c0_15 = arith.constant 0 : index
      %18 = vector.load %arg4[%c0_14, %c0_15] : memref<128x128xf32, #tpu.memory_space<vmem>>, vector<128x128xf32>
      tpu.vector_store %arg4[%c0_14, %c0_15], %17 {strides = array<i32>} : memref<128x128xf32, #tpu.memory_space<vmem>>, vector<128x128xf32>,
    } else {
    }
    return
  }
  func.func @transform_0(%arg0: i32, %arg1: i32) -> (i32, i32) {
    %c0_i32 = arith.constant 0 : i32
    return %arg0, %arg1 : i32, i32
  }
  func.func @transform_1(%arg0: i32, %arg1: i32) -> (i32, i32) {
    %c0_i32 = arith.constant 0 : i32
    %c0_i32_0 = arith.constant 0 : i32
    return %arg1, %c0_i32 : i32, i32
  }
  func.func @transform_2(%arg0: i32, %arg1: i32) -> (i32, i32) {
    %c0_i32 = arith.constant 0 : i32
    %c0_i32_0 = arith.constant 0 : i32
    return %arg0, %c0_i32 : i32, i32
  }
}

module attributes {stable_mosaic.version = 11 : i64} {
  func.func @_mm_bn_stats_kernel(%arg0: i32, %arg1: i32, %arg2: memref<32x256xbf16, #tpu.memory_space<vmem>>, %arg3: memref<256x128xbf16, #tpu.memory_space<vmem>>, %arg4: memref<32x128xf32, #tpu.memory_space<vmem>>, %arg5: memref<1x128xf32, #tpu.memory_space<vmem>>, %arg6: memref<1x128xf32, #tpu.memory_space<vmem>>, %arg7: memref<32x128xf32, #tpu.memory_space<vmem>>) attributes {dimension_semantics = [#tpu.dimension_semantics<arbitrary>, #tpu.dimension_semantics<arbitrary>], iteration_bounds = array<i64: 1, 1>, scalar_prefetch = 0 : i64, scratch_operands = 1 : i64, tpu.core_type = #tpu.core_type<tc>, window_params = [{transform_indices = @transform_0, window_bounds = array<i64: 32, 256>}, {transform_indices = @transform_1, window_bounds = array<i64: 256, 128>}, {transform_indices = @transform_2, window_bounds = array<i64: 32, 128>}, {pipeline_mode = #tpu.pipeline_mode<synchronous>, transform_indices = @transform_3, window_bounds = array<i64: 1, 128>}, {pipeline_mode = #tpu.pipeline_mode<synchronous>, transform_indices = @transform_4, window_bounds = array<i64: 1, 128>}]} {
    %c0_i32 = arith.constant 0 : i32
    %0 = arith.cmpi eq, %arg0, %c0_i32 : i32
    %c0_i32_0 = arith.constant 0 : i32
    %1 = arith.cmpi eq, %arg1, %c0_i32_0 : i32
    %2 = arith.andi %0, %1 : i1
    %3 = arith.extui %2 : i1 to i32
    %c0_i32_1 = arith.constant 0 : i32
    %4 = arith.cmpi ne, %3, %c0_i32_1 : i32
    scf.if %4 {
      %cst_13 = arith.constant 0.000000e+00 : f32
      %17 = vector.broadcast %cst_13 : f32 to vector<1x128xf32>
      %c0_14 = arith.constant 0 : index
      %c0_15 = arith.constant 0 : index
      %18 = vector.load %arg5[%c0_14, %c0_15] : memref<1x128xf32, #tpu.memory_space<vmem>>, vector<1x128xf32>
      tpu.vector_store %arg5[%c0_14, %c0_15], %17 {strides = array<i32>} : memref<1x128xf32, #tpu.memory_space<vmem>>, vector<1x128xf32>,
      %cst_16 = arith.constant 0.000000e+00 : f32
      %19 = vector.broadcast %cst_16 : f32 to vector<1x128xf32>
      %c0_17 = arith.constant 0 : index
      %c0_18 = arith.constant 0 : index
      %20 = vector.load %arg6[%c0_17, %c0_18] : memref<1x128xf32, #tpu.memory_space<vmem>>, vector<1x128xf32>
      tpu.vector_store %arg6[%c0_17, %c0_18], %19 {strides = array<i32>} : memref<1x128xf32, #tpu.memory_space<vmem>>, vector<1x128xf32>,
    } else {
    }
    %c0_i32_2 = arith.constant 0 : i32
    %5 = arith.cmpi eq, %arg1, %c0_i32_2 : i32
    %6 = arith.extui %5 : i1 to i32
    %c0_i32_3 = arith.constant 0 : i32
    %7 = arith.cmpi ne, %6, %c0_i32_3 : i32
    scf.if %7 {
      %cst_13 = arith.constant 0.000000e+00 : f32
      %17 = vector.broadcast %cst_13 : f32 to vector<32x128xf32>
      %c0_14 = arith.constant 0 : index
      %c0_15 = arith.constant 0 : index
      %18 = vector.load %arg7[%c0_14, %c0_15] : memref<32x128xf32, #tpu.memory_space<vmem>>, vector<32x128xf32>
      tpu.vector_store %arg7[%c0_14, %c0_15], %17 {strides = array<i32>} : memref<32x128xf32, #tpu.memory_space<vmem>>, vector<32x128xf32>,
    } else {
    }
    %c0 = arith.constant 0 : index
    %c0_4 = arith.constant 0 : index
    %8 = vector.load %arg7[%c0, %c0_4] : memref<32x128xf32, #tpu.memory_space<vmem>>, vector<32x128xf32>
    %c0_5 = arith.constant 0 : index
    %c0_6 = arith.constant 0 : index
    %9 = vector.load %arg2[%c0_5, %c0_6] : memref<32x256xbf16, #tpu.memory_space<vmem>>, vector<32x256xbf16>
    %c0_7 = arith.constant 0 : index
    %c0_8 = arith.constant 0 : index
    %10 = vector.load %arg3[%c0_7, %c0_8] : memref<256x128xbf16, #tpu.memory_space<vmem>>, vector<256x128xbf16>
    %cst = arith.constant dense<0.000000e+00> : vector<32x128xf32>
    %11 = tpu.matmul %9, %10, %cst {dimension_numbers = #tpu.dot_dimension_numbers<[1], [0], [0], [1], [0, 0, 1, 1], [], []>} : vector<32x256xbf16>, vector<256x128xbf16>, vector<32x128xf32> -> vector<32x128xf32>
    %12 = arith.addf %8, %11 : vector<32x128xf32>
    %c0_9 = arith.constant 0 : index
    %c0_10 = arith.constant 0 : index
    %13 = vector.load %arg7[%c0_9, %c0_10] : memref<32x128xf32, #tpu.memory_space<vmem>>, vector<32x128xf32>
    tpu.vector_store %arg7[%c0_9, %c0_10], %12 {strides = array<i32>} : memref<32x128xf32, #tpu.memory_space<vmem>>, vector<32x128xf32>,
    %c0_i32_11 = arith.constant 0 : i32
    %14 = arith.cmpi eq, %arg1, %c0_i32_11 : i32
    %15 = arith.extui %14 : i1 to i32
    %c0_i32_12 = arith.constant 0 : i32
    %16 = arith.cmpi ne, %15, %c0_i32_12 : i32
    scf.if %16 {
      %c0_13 = arith.constant 0 : index
      %c0_14 = arith.constant 0 : index
      %17 = vector.load %arg7[%c0_13, %c0_14] : memref<32x128xf32, #tpu.memory_space<vmem>>, vector<32x128xf32>
      %c0_15 = arith.constant 0 : index
      %c0_16 = arith.constant 0 : index
      %18 = vector.load %arg4[%c0_15, %c0_16] : memref<32x128xf32, #tpu.memory_space<vmem>>, vector<32x128xf32>
      tpu.vector_store %arg4[%c0_15, %c0_16], %17 {strides = array<i32>} : memref<32x128xf32, #tpu.memory_space<vmem>>, vector<32x128xf32>,
      %c0_17 = arith.constant 0 : index
      %c0_18 = arith.constant 0 : index
      %19 = vector.load %arg5[%c0_17, %c0_18] : memref<1x128xf32, #tpu.memory_space<vmem>>, vector<1x128xf32>
      %cst_19 = arith.constant dense<0.000000e+00> : vector<128xf32>
      %20 = vector.multi_reduction <add>, %17, %cst_19 [0] : vector<32x128xf32> to vector<128xf32>
      %21 = vector.shape_cast %20 : vector<128xf32> to vector<1x128xf32>
      %22 = arith.addf %19, %21 : vector<1x128xf32>
      %c0_20 = arith.constant 0 : index
      %c0_21 = arith.constant 0 : index
      %23 = vector.load %arg5[%c0_20, %c0_21] : memref<1x128xf32, #tpu.memory_space<vmem>>, vector<1x128xf32>
      tpu.vector_store %arg5[%c0_20, %c0_21], %22 {strides = array<i32>} : memref<1x128xf32, #tpu.memory_space<vmem>>, vector<1x128xf32>,
      %c0_22 = arith.constant 0 : index
      %c0_23 = arith.constant 0 : index
      %24 = vector.load %arg6[%c0_22, %c0_23] : memref<1x128xf32, #tpu.memory_space<vmem>>, vector<1x128xf32>
      %25 = arith.mulf %17, %17 : vector<32x128xf32>
      %cst_24 = arith.constant dense<0.000000e+00> : vector<128xf32>
      %26 = vector.multi_reduction <add>, %25, %cst_24 [0] : vector<32x128xf32> to vector<128xf32>
      %27 = vector.shape_cast %26 : vector<128xf32> to vector<1x128xf32>
      %28 = arith.addf %24, %27 : vector<1x128xf32>
      %c0_25 = arith.constant 0 : index
      %c0_26 = arith.constant 0 : index
      %29 = vector.load %arg6[%c0_25, %c0_26] : memref<1x128xf32, #tpu.memory_space<vmem>>, vector<1x128xf32>
      tpu.vector_store %arg6[%c0_25, %c0_26], %28 {strides = array<i32>} : memref<1x128xf32, #tpu.memory_space<vmem>>, vector<1x128xf32>,
    } else {
    }
    return
  }
  func.func @transform_0(%arg0: i32, %arg1: i32) -> (i32, i32) {
    %c0_i32 = arith.constant 0 : i32
    return %arg0, %arg1 : i32, i32
  }
  func.func @transform_1(%arg0: i32, %arg1: i32) -> (i32, i32) {
    %c0_i32 = arith.constant 0 : i32
    %c0_i32_0 = arith.constant 0 : i32
    return %arg1, %c0_i32 : i32, i32
  }
  func.func @transform_2(%arg0: i32, %arg1: i32) -> (i32, i32) {
    %c0_i32 = arith.constant 0 : i32
    %c0_i32_0 = arith.constant 0 : i32
    return %arg0, %c0_i32 : i32, i32
  }
  func.func @transform_3(%arg0: i32, %arg1: i32) -> (i32, i32) {
    %c0_i32 = arith.constant 0 : i32
    %c0_i32_0 = arith.constant 0 : i32
    %c0_i32_1 = arith.constant 0 : i32
    return %c0_i32, %c0_i32_0 : i32, i32
  }
  func.func @transform_4(%arg0: i32, %arg1: i32) -> (i32, i32) {
    %c0_i32 = arith.constant 0 : i32
    %c0_i32_0 = arith.constant 0 : i32
    %c0_i32_1 = arith.constant 0 : i32
    return %c0_i32, %c0_i32_0 : i32, i32
  }
}

module attributes {stable_mosaic.version = 11 : i64} {
  func.func @_bn_apply_kernel(%arg0: i32, %arg1: memref<32x128xf32, #tpu.memory_space<vmem>>, %arg2: memref<1x128xf32, #tpu.memory_space<vmem>>, %arg3: memref<1x128xf32, #tpu.memory_space<vmem>>, %arg4: memref<1x128xf32, #tpu.memory_space<vmem>>, %arg5: memref<1x128xf32, #tpu.memory_space<vmem>>, %arg6: memref<32x128xf32, #tpu.memory_space<vmem>>) attributes {dimension_semantics = [#tpu.dimension_semantics<parallel>], iteration_bounds = array<i64: 1>, scalar_prefetch = 0 : i64, scratch_operands = 0 : i64, tpu.core_type = #tpu.core_type<tc>, window_params = [{transform_indices = @transform_0, window_bounds = array<i64: 32, 128>}, {pipeline_mode = #tpu.pipeline_mode<synchronous>, transform_indices = @transform_1, window_bounds = array<i64: 1, 128>}, {pipeline_mode = #tpu.pipeline_mode<synchronous>, transform_indices = @transform_2, window_bounds = array<i64: 1, 128>}, {pipeline_mode = #tpu.pipeline_mode<synchronous>, transform_indices = @transform_3, window_bounds = array<i64: 1, 128>}, {pipeline_mode = #tpu.pipeline_mode<synchronous>, transform_indices = @transform_4, window_bounds = array<i64: 1, 128>}, {transform_indices = @transform_5, window_bounds = array<i64: 32, 128>}]} {
    %c0 = arith.constant 0 : index
    %c0_0 = arith.constant 0 : index
    %0 = vector.load %arg2[%c0, %c0_0] : memref<1x128xf32, #tpu.memory_space<vmem>>, vector<1x128xf32>
    %cst = arith.constant 3.125000e-02 : f32
    %1 = vector.broadcast %cst : f32 to vector<1x128xf32>
    %2 = arith.mulf %0, %1 : vector<1x128xf32>
    %c0_1 = arith.constant 0 : index
    %c0_2 = arith.constant 0 : index
    %3 = vector.load %arg3[%c0_1, %c0_2] : memref<1x128xf32, #tpu.memory_space<vmem>>, vector<1x128xf32>
    %cst_3 = arith.constant 3.125000e-02 : f32
    %4 = vector.broadcast %cst_3 : f32 to vector<1x128xf32>
    %5 = arith.mulf %3, %4 : vector<1x128xf32>
    %6 = arith.mulf %2, %2 : vector<1x128xf32>
    %7 = arith.subf %5, %6 : vector<1x128xf32>
    %cst_4 = arith.constant 0.000000e+00 : f32
    %8 = vector.broadcast %cst_4 : f32 to vector<1x128xf32>
    %9 = arith.maximumf %7, %8 : vector<1x128xf32>
    %cst_5 = arith.constant 9.99999974E-6 : f32
    %10 = vector.broadcast %cst_5 : f32 to vector<1x128xf32>
    %11 = arith.addf %9, %10 : vector<1x128xf32>
    %12 = math.rsqrt %11 : vector<1x128xf32>
    %c0_6 = arith.constant 0 : index
    %c0_7 = arith.constant 0 : index
    %13 = vector.load %arg4[%c0_6, %c0_7] : memref<1x128xf32, #tpu.memory_space<vmem>>, vector<1x128xf32>
    %14 = arith.mulf %12, %13 : vector<1x128xf32>
    %c0_8 = arith.constant 0 : index
    %c0_9 = arith.constant 0 : index
    %15 = vector.load %arg1[%c0_8, %c0_9] : memref<32x128xf32, #tpu.memory_space<vmem>>, vector<32x128xf32>
    %16 = vector.broadcast %2 : vector<1x128xf32> to vector<32x128xf32>
    %17 = arith.subf %15, %16 : vector<32x128xf32>
    %18 = vector.broadcast %14 : vector<1x128xf32> to vector<32x128xf32>
    %19 = arith.mulf %17, %18 : vector<32x128xf32>
    %c0_10 = arith.constant 0 : index
    %c0_11 = arith.constant 0 : index
    %20 = vector.load %arg5[%c0_10, %c0_11] : memref<1x128xf32, #tpu.memory_space<vmem>>, vector<1x128xf32>
    %21 = vector.broadcast %20 : vector<1x128xf32> to vector<32x128xf32>
    %22 = arith.addf %19, %21 : vector<32x128xf32>
    %cst_12 = arith.constant 0.000000e+00 : f32
    %23 = vector.broadcast %cst_12 : f32 to vector<32x128xf32>
    %24 = arith.cmpf oge, %22, %23 : vector<32x128xf32>
    %cst_13 = arith.constant 2.000000e-01 : f32
    %25 = vector.broadcast %cst_13 : f32 to vector<32x128xf32>
    %26 = arith.mulf %25, %22 : vector<32x128xf32>
    %27 = arith.select %24, %22, %26 : vector<32x128xi1>, vector<32x128xf32>
    %c0_14 = arith.constant 0 : index
    %c0_15 = arith.constant 0 : index
    %28 = vector.load %arg6[%c0_14, %c0_15] : memref<32x128xf32, #tpu.memory_space<vmem>>, vector<32x128xf32>
    tpu.vector_store %arg6[%c0_14, %c0_15], %27 {strides = array<i32>} : memref<32x128xf32, #tpu.memory_space<vmem>>, vector<32x128xf32>,
    return
  }
  func.func @transform_0(%arg0: i32) -> (i32, i32) {
    %c0_i32 = arith.constant 0 : i32
    %c0_i32_0 = arith.constant 0 : i32
    return %arg0, %c0_i32 : i32, i32
  }
  func.func @transform_1(%arg0: i32) -> (i32, i32) {
    %c0_i32 = arith.constant 0 : i32
    %c0_i32_0 = arith.constant 0 : i32
    %c0_i32_1 = arith.constant 0 : i32
    return %c0_i32, %c0_i32_0 : i32, i32
  }
  func.func @transform_2(%arg0: i32) -> (i32, i32) {
    %c0_i32 = arith.constant 0 : i32
    %c0_i32_0 = arith.constant 0 : i32
    %c0_i32_1 = arith.constant 0 : i32
    return %c0_i32, %c0_i32_0 : i32, i32
  }
  func.func @transform_3(%arg0: i32) -> (i32, i32) {
    %c0_i32 = arith.constant 0 : i32
    %c0_i32_0 = arith.constant 0 : i32
    %c0_i32_1 = arith.constant 0 : i32
    return %c0_i32, %c0_i32_0 : i32, i32
  }
  func.func @transform_4(%arg0: i32) -> (i32, i32) {
    %c0_i32 = arith.constant 0 : i32
    %c0_i32_0 = arith.constant 0 : i32
    %c0_i32_1 = arith.constant 0 : i32
    return %c0_i32, %c0_i32_0 : i32, i32
  }
  func.func @transform_5(%arg0: i32) -> (i32, i32) {
    %c0_i32 = arith.constant 0 : i32
    %c0_i32_0 = arith.constant 0 : i32
    return %arg0, %c0_i32 : i32, i32
  }
}

module attributes {stable_mosaic.version = 11 : i64} {
  func.func @_mm_kernel(%arg0: i32, %arg1: i32, %arg2: memref<16x512xbf16, #tpu.memory_space<vmem>>, %arg3: memref<512x128xbf16, #tpu.memory_space<vmem>>, %arg4: memref<16x128xf32, #tpu.memory_space<vmem>>, %arg5: memref<16x128xf32, #tpu.memory_space<vmem>>) attributes {dimension_semantics = [#tpu.dimension_semantics<parallel>, #tpu.dimension_semantics<arbitrary>], iteration_bounds = array<i64: 1, 1>, scalar_prefetch = 0 : i64, scratch_operands = 1 : i64, tpu.core_type = #tpu.core_type<tc>, window_params = [{transform_indices = @transform_0, window_bounds = array<i64: 16, 512>}, {transform_indices = @transform_1, window_bounds = array<i64: 512, 128>}, {transform_indices = @transform_2, window_bounds = array<i64: 16, 128>}]} {
    %c0_i32 = arith.constant 0 : i32
    %0 = arith.cmpi eq, %arg1, %c0_i32 : i32
    %1 = arith.extui %0 : i1 to i32
    %c0_i32_0 = arith.constant 0 : i32
    %2 = arith.cmpi ne, %1, %c0_i32_0 : i32
    scf.if %2 {
      %cst_10 = arith.constant 0.000000e+00 : f32
      %12 = vector.broadcast %cst_10 : f32 to vector<16x128xf32>
      %c0_11 = arith.constant 0 : index
      %c0_12 = arith.constant 0 : index
      %13 = vector.load %arg5[%c0_11, %c0_12] : memref<16x128xf32, #tpu.memory_space<vmem>>, vector<16x128xf32>
      tpu.vector_store %arg5[%c0_11, %c0_12], %12 {strides = array<i32>} : memref<16x128xf32, #tpu.memory_space<vmem>>, vector<16x128xf32>,
    } else {
    }
    %c0 = arith.constant 0 : index
    %c0_1 = arith.constant 0 : index
    %3 = vector.load %arg5[%c0, %c0_1] : memref<16x128xf32, #tpu.memory_space<vmem>>, vector<16x128xf32>
    %c0_2 = arith.constant 0 : index
    %c0_3 = arith.constant 0 : index
    %4 = vector.load %arg2[%c0_2, %c0_3] : memref<16x512xbf16, #tpu.memory_space<vmem>>, vector<16x512xbf16>
    %c0_4 = arith.constant 0 : index
    %c0_5 = arith.constant 0 : index
    %5 = vector.load %arg3[%c0_4, %c0_5] : memref<512x128xbf16, #tpu.memory_space<vmem>>, vector<512x128xbf16>
    %cst = arith.constant dense<0.000000e+00> : vector<16x128xf32>
    %6 = tpu.matmul %4, %5, %cst {dimension_numbers = #tpu.dot_dimension_numbers<[1], [0], [0], [1], [0, 0, 1, 1], [], []>} : vector<16x512xbf16>, vector<512x128xbf16>, vector<16x128xf32> -> vector<16x128xf32>
    %7 = arith.addf %3, %6 : vector<16x128xf32>
    %c0_6 = arith.constant 0 : index
    %c0_7 = arith.constant 0 : index
    %8 = vector.load %arg5[%c0_6, %c0_7] : memref<16x128xf32, #tpu.memory_space<vmem>>, vector<16x128xf32>
    tpu.vector_store %arg5[%c0_6, %c0_7], %7 {strides = array<i32>} : memref<16x128xf32, #tpu.memory_space<vmem>>, vector<16x128xf32>,
    %c0_i32_8 = arith.constant 0 : i32
    %9 = arith.cmpi eq, %arg1, %c0_i32_8 : i32
    %10 = arith.extui %9 : i1 to i32
    %c0_i32_9 = arith.constant 0 : i32
    %11 = arith.cmpi ne, %10, %c0_i32_9 : i32
    scf.if %11 {
      %c0_10 = arith.constant 0 : index
      %c0_11 = arith.constant 0 : index
      %12 = vector.load %arg5[%c0_10, %c0_11] : memref<16x128xf32, #tpu.memory_space<vmem>>, vector<16x128xf32>
      %c0_12 = arith.constant 0 : index
      %c0_13 = arith.constant 0 : index
      %13 = vector.load %arg4[%c0_12, %c0_13] : memref<16x128xf32, #tpu.memory_space<vmem>>, vector<16x128xf32>
      tpu.vector_store %arg4[%c0_12, %c0_13], %12 {strides = array<i32>} : memref<16x128xf32, #tpu.memory_space<vmem>>, vector<16x128xf32>,
    } else {
    }
    return
  }
  func.func @transform_0(%arg0: i32, %arg1: i32) -> (i32, i32) {
    %c0_i32 = arith.constant 0 : i32
    return %arg0, %arg1 : i32, i32
  }
  func.func @transform_1(%arg0: i32, %arg1: i32) -> (i32, i32) {
    %c0_i32 = arith.constant 0 : i32
    %c0_i32_0 = arith.constant 0 : i32
    return %arg1, %c0_i32 : i32, i32
  }
  func.func @transform_2(%arg0: i32, %arg1: i32) -> (i32, i32) {
    %c0_i32 = arith.constant 0 : i32
    %c0_i32_0 = arith.constant 0 : i32
    return %arg0, %c0_i32 : i32, i32
  }
}

</mosaic_0001>

<bundles_post_ra>
// kernel: _lambda_.6
= control target key start
LH: loop header
LB: loop body
LE: loop exit
PB: predicated region body
PF: predicated region fallthrough
CT: control target
= control target key end

     0   :  { %vm136_vm0 = vcmask 523264   ;;  %s560_s1 = inlined_call_operand.vmem [shape: bf16[64,128], index: 1, kind: input, shape index: {}]   ;;  %s561_s0 = inlined_call_operand.vmem [shape: bf16[128,64], index: 0, kind: input, shape index: {}]   ;;  %s562_s2 = inlined_call_operand.vmem [shape: f32[128,128], index: 2, kind: output, shape index: {}]  }
   0x1   :  { %v441_v0 = vld [vmem:[%s560_s1] sm:$0xff]   ;;  %v442_v1 = vld [vmem:[%s560_s1 + $0x8] sm:$0xff]   ;;  %v443_v2 = vld [vmem:[%s560_s1 + $0x10] sm:$0xff]  }
   0x2   :  { %409 = vmatprep.subr.bf16.mxu0 %v441_v0  ;;  %433 = vmatprep.subr.bf16.mxu1 %v441_v0  ;;  %v445_v3 = vld [vmem:[%s561_s0] sm:$0xff]   ;;  %v444_v5 = vld [vmem:[%s560_s1 + $0x18] sm:$0xff]   ;;  %v447_v6 = vld [vmem:[%s561_s0 + $0x8] sm:$0xff]  }
   0x3   :  { %410 = vmatpush3.bf16.msra.mxu0 %v441_v0  ;;  %437 = vmatpush3.bf16.msra.mxu1 %v441_v0  ;;  %v446_v4 = vld [vmem:[%s561_s0 + $0x20] sm:$0xff]   ;;  %v448_v7 = vld [vmem:[%s561_s0 + $0x28] sm:$0xff]   ;;  %v449_v8 = vld [vmem:[%s561_s0 + $0x10] sm:$0xff]  }
   0x4   :  { %411 = vmatprep.subr.bf16.mxu0 %v442_v1  ;;  %434 = vmatprep.subr.bf16.mxu1 %v442_v1  ;;  %v450_v9 = vld [vmem:[%s561_s0 + $0x30] sm:$0xff]   ;;  %v451_v10 = vld [vmem:[%s561_s0 + $0x18] sm:$0xff]  }
   0x5   :  { %417 = vmatprep.mubr.msk.bf16.mxu0 %vm136_vm0, %v445_v3  ;;  %425 = vmatprep.mubr.msk.bf16.mxu1 %vm136_vm0, %v446_v4  ;;  %v452_v11 = vld [vmem:[%s561_s0 + $0x38] sm:$0xff]  }
   0x7   :  { %412 = vmatpush3.bf16.msra.mxu0 %v442_v1  ;;  %438 = vmatpush3.bf16.msra.mxu1 %v442_v1 }
   0x8   :  { %413 = vmatprep.subr.bf16.mxu0 %v443_v2  ;;  %435 = vmatprep.subr.bf16.mxu1 %v443_v2 }
   0xb   :  { %414 = vmatpush3.bf16.msra.mxu0 %v443_v2  ;;  %439 = vmatpush3.bf16.msra.mxu1 %v443_v2 }
   0xc   :  { %415 = vmatprep.subr.bf16.mxu0 %v444_v5  ;;  %436 = vmatprep.subr.bf16.mxu1 %v444_v5 }
   0xf   :  { %416 = vmatpush3.bf16.msra.mxu0 %v444_v5  ;;  %440 = vmatpush3.bf16.msra.mxu1 %v444_v5 }
  0x12   :  { %418 = vmatmul.mubr.msk.bf16.vlgmr.msra.gmra.mrb[0].mxu0 %vm136_vm0, %v447_v6  ;;  %426 = vmatmul.mubr.msk.bf16.vlgmr.msra.gmra.mrb[0].mxu1 %vm136_vm0, %v448_v7 }
  0x13   :  { %421 = vmatprep.mubr.msk.bf16.mxu0 %vm136_vm0, %v449_v8  ;;  %429 = vmatprep.mubr.msk.bf16.mxu1 %vm136_vm0, %v450_v9 }
  0x1a   :  { %422 = vmatmul.mubr.msk.bf16.gmra.mrb[4].mxu0 %vm136_vm0, %v451_v10  ;;  %430 = vmatmul.mubr.msk.bf16.gmra.mrb[4].mxu1 %vm136_vm0, %v452_v11 }
  0xe5   :  { %v419_v12 = vpop.f32.mrb[0].mxu0  ;;  %v427_v13 = vpop.f32.mrb[0].mxu1 }
  0xe6   :  { %vm311_vm1 = vcmp.ge.f32.partialorder %v419_v12, 0.0  ;;  %v327_v14 = vmul.f32 0.2, %v419_v12  ;;  %vm319_vm2 = vcmp.ge.f32.partialorder %v427_v13, 0.0  ;;  %v335_v15 = vmul.f32 0.2, %v427_v13 }
  0xe7   :  { %v195_v16 = vpop.f32.mrb[1].mxu0  ;;  %v227_v17 = vpop.f32.mrb[1].mxu1 }
  0xe8   :  { %v343_v18 = vsel %vm311_vm1, %v419_v12, %v327_v14  ;;  %v351_v19 = vsel %vm319_vm2, %v427_v13, %v335_v15  ;;  %vm309_vm3 = vcmp.ge.f32.partialorder %v195_v16, 0.0  ;;  %v325_v20 = vmul.f32 0.2, %v195_v16  ;;  %v420_v21 = vpop.f32.mrb[2].mxu0  ;;  %v428_v22 = vpop.f32.mrb[2].mxu1 }
  0xe9   :  { %359 = vst [vmem:[%s562_s2 + $0x10] sm:$0xff] %v343_v18  ;;  %367 = vst [vmem:[%s562_s2 + $0x50] sm:$0xff] %v351_v19  ;;  %vm317_vm4 = vcmp.ge.f32.partialorder %v227_v17, 0.0  ;;  %v333_v23 = vmul.f32 0.2, %v227_v17  ;;  %vm312_vm5 = vcmp.ge.f32.partialorder %v420_v21, 0.0 }
  0xea   :  { %v328_v24 = vmul.f32 0.2, %v420_v21  ;;  %v341_v25 = vsel %vm309_vm3, %v195_v16, %v325_v20  ;;  %vm320_vm6 = vcmp.ge.f32.partialorder %v428_v22, 0.0  ;;  %v336_v26 = vmul.f32 0.2, %v428_v22  ;;  %v198_v27 = vpop.f32.mrb[3].mxu0 }
  0xeb   :  { %v230_v28 = vpop.f32.mrb[3].mxu1  ;;  %357 = vst [vmem:[%s562_s2] sm:$0xff] %v341_v25  ;;  %v349_v29 = vsel %vm317_vm4, %v227_v17, %v333_v23  ;;  %vm310_vm7 = vcmp.ge.f32.partialorder %v198_v27, 0.0  ;;  %v326_v31 = vmul.f32 0.2, %v198_v27 }
  0xec   :  { %v344_v30 = vsel %vm312_vm5, %v420_v21, %v328_v24  ;;  %365 = vst [vmem:[%s562_s2 + $0x40] sm:$0xff] %v349_v29  ;;  %v352_v32 = vsel %vm320_vm6, %v428_v22, %v336_v26  ;;  %vm318_vm8 = vcmp.ge.f32.partialorder %v230_v28, 0.0  ;;  %v334_v33 = vmul.f32 0.2, %v230_v28 }
  0xed   :  { %360 = vst [vmem:[%s562_s2 + $0x18] sm:$0xff] %v344_v30  ;;  %368 = vst [vmem:[%s562_s2 + $0x58] sm:$0xff] %v352_v32  ;;  %v342_v34 = vsel %vm310_vm7, %v198_v27, %v326_v31  ;;  %v423_v35 = vpop.f32.mrb[4].mxu0  ;;  %v431_v36 = vpop.f32.mrb[4].mxu1 }
  0xee   :  { %358 = vst [vmem:[%s562_s2 + $0x8] sm:$0xff] %v342_v34  ;;  %v350_v37 = vsel %vm318_vm8, %v230_v28, %v334_v33  ;;  %vm315_vm9 = vcmp.ge.f32.partialorder %v423_v35, 0.0  ;;  %v331_v38 = vmul.f32 0.2, %v423_v35  ;;  %vm323_vm10 = vcmp.ge.f32.partialorder %v431_v36, 0.0  ;;  %v211_v39 = vpop.f32.mrb[5].mxu0 }
  0xef   :  { %v243_v40 = vpop.f32.mrb[5].mxu1  ;;  %366 = vst [vmem:[%s562_s2 + $0x48] sm:$0xff] %v350_v37  ;;  %v339_v41 = vmul.f32 0.2, %v431_v36  ;;  %vm313_vm11 = vcmp.ge.f32.partialorder %v211_v39, 0.0  ;;  %v424_v45 = vpop.f32.mrb[6].mxu0 }
  0xf0   :  { %v329_v42 = vmul.f32 0.2, %v211_v39  ;;  %vm321_vm12 = vcmp.ge.f32.partialorder %v243_v40, 0.0  ;;  %v347_v43 = vsel %vm315_vm9, %v423_v35, %v331_v38  ;;  %v337_v44 = vmul.f32 0.2, %v243_v40  ;;  %v432_v46 = vpop.f32.mrb[6].mxu1 }
  0xf1   :  { %363 = vst [vmem:[%s562_s2 + $0x30] sm:$0xff] %v347_v43  ;;  %v355_v47 = vsel %vm323_vm10, %v431_v36, %v339_v41  ;;  %vm316_vm13 = vcmp.ge.f32.partialorder %v424_v45, 0.0  ;;  %v332_v49 = vmul.f32 0.2, %v424_v45  ;;  %v214_v50 = vpop.f32.mrb[7].mxu0  ;;  %v246_v51 = vpop.f32.mrb[7].mxu1 }
  0xf2   :  { %v345_v48 = vsel %vm313_vm11, %v211_v39, %v329_v42  ;;  %371 = vst [vmem:[%s562_s2 + $0x70] sm:$0xff] %v355_v47  ;;  %v353_v52 = vsel %vm321_vm12, %v243_v40, %v337_v44  ;;  %vm324_vm14 = vcmp.ge.f32.partialorder %v432_v46, 0.0  ;;  %v340_v53 = vmul.f32 0.2, %v432_v46 }
  0xf3   :  { %361 = vst [vmem:[%s562_s2 + $0x20] sm:$0xff] %v345_v48  ;;  %vm314_vm15 = vcmp.ge.f32.partialorder %v214_v50, 0.0  ;;  %369 = vst [vmem:[%s562_s2 + $0x60] sm:$0xff] %v353_v52  ;;  %v348_v54 = vsel %vm316_vm13, %v424_v45, %v332_v49  ;;  %v330_v55 = vmul.f32 0.2, %v214_v50  ;;  %vm322_vm0 = vcmp.ge.f32.partialorder %v246_v51, 0.0 }
  0xf4   :  { %v338_v56 = vmul.f32 0.2, %v246_v51  ;;  %364 = vst [vmem:[%s562_s2 + $0x38] sm:$0xff] %v348_v54  ;;  %v356_v57 = vsel %vm324_vm14, %v432_v46, %v340_v53 }
  0xf5   :  { %372 = vst [vmem:[%s562_s2 + $0x78] sm:$0xff] %v356_v57  ;;  %v346_v58 = vsel %vm314_vm15, %v214_v50, %v330_v55 }
  0xf6   :  { %v354_v59 = vsel %vm322_vm0, %v246_v51, %v338_v56  ;;  %362 = vst [vmem:[%s562_s2 + $0x28] sm:$0xff] %v346_v58 }
  0xf7   :  { %370 = vst [vmem:[%s562_s2 + $0x68] sm:$0xff] %v354_v59 }

// kernel: _lambda_.5
= control target key start
LH: loop header
LB: loop body
LE: loop exit
PB: predicated region body
PF: predicated region fallthrough
CT: control target
= control target key end

     0   :  { %vm128_vm0 = vcmask 392192   ;;  %s542_s1 = inlined_call_operand.vmem [shape: bf16[48,128], index: 1, kind: input, shape index: {}]   ;;  %s543_s0 = inlined_call_operand.vmem [shape: bf16[128,48], index: 0, kind: input, shape index: {}]   ;;  %s544_s2 = inlined_call_operand.vmem [shape: f32[128,128], index: 2, kind: output, shape index: {}]  }
   0x1   :  { %v427_v0 = vld [vmem:[%s542_s1] sm:$0xff]   ;;  %v428_v1 = vld [vmem:[%s542_s1 + $0x8] sm:$0xff]   ;;  %v429_v2 = vld [vmem:[%s542_s1 + $0x10] sm:$0xff]  }
   0x2   :  { %399 = vmatprep.subr.bf16.mxu0 %v427_v0  ;;  %421 = vmatprep.subr.bf16.mxu1 %v427_v0  ;;  %v430_v3 = vld [vmem:[%s543_s0] sm:$0xff]   ;;  %v432_v5 = vld [vmem:[%s543_s0 + $0x8] sm:$0xff]   ;;  %v434_v7 = vld [vmem:[%s543_s0 + $0x10] sm:$0xff]  }
   0x3   :  { %400 = vmatpush3.bf16.msra.mxu0 %v427_v0  ;;  %424 = vmatpush3.bf16.msra.mxu1 %v427_v0  ;;  %v431_v4 = vld [vmem:[%s543_s0 + $0x20] sm:$0xff]   ;;  %v433_v6 = vld [vmem:[%s543_s0 + $0x28] sm:$0xff]   ;;  %v435_v8 = vld [vmem:[%s543_s0 + $0x30] sm:$0xff]  }
   0x4   :  { %401 = vmatprep.subr.bf16.mxu0 %v428_v1  ;;  %422 = vmatprep.subr.bf16.mxu1 %v428_v1  ;;  %v436_v9 = vld [vmem:[%s543_s0 + $0x18] sm:$0xff]  }
   0x5   :  { %405 = vmatprep.mubr.msk.bf16.mxu0 %vm128_vm0, %v430_v3  ;;  %413 = vmatprep.mubr.msk.bf16.mxu1 %vm128_vm0, %v431_v4  ;;  %v437_v10 = vld [vmem:[%s543_s0 + $0x38] sm:$0xff]  }
   0x7   :  { %402 = vmatpush3.bf16.msra.mxu0 %v428_v1  ;;  %425 = vmatpush3.bf16.msra.mxu1 %v428_v1 }
   0x8   :  { %403 = vmatprep.subr.bf16.mxu0 %v429_v2  ;;  %423 = vmatprep.subr.bf16.mxu1 %v429_v2 }
   0xb   :  { %404 = vmatpush3.bf16.msra.mxu0 %v429_v2  ;;  %426 = vmatpush3.bf16.msra.mxu1 %v429_v2 }
   0xe   :  { %406 = vmatmul.mubr.msk.bf16.vlgmr.msra.gmra.mrb[0].mxu0 %vm128_vm0, %v432_v5  ;;  %414 = vmatmul.mubr.msk.bf16.vlgmr.msra.gmra.mrb[0].mxu1 %vm128_vm0, %v433_v6 }
   0xf   :  { %409 = vmatprep.mubr.msk.bf16.mxu0 %vm128_vm0, %v434_v7  ;;  %417 = vmatprep.mubr.msk.bf16.mxu1 %vm128_vm0, %v435_v8 }
  0x16   :  { %410 = vmatmul.mubr.msk.bf16.gmra.mrb[4].mxu0 %vm128_vm0, %v436_v9  ;;  %418 = vmatmul.mubr.msk.bf16.gmra.mrb[4].mxu1 %vm128_vm0, %v437_v10 }
  0xe1   :  { %v407_v11 = vpop.f32.mrb[0].mxu0  ;;  %v415_v12 = vpop.f32.mrb[0].mxu1 }
  0xe2   :  { %vm303_vm1 = vcmp.ge.f32.partialorder %v407_v11, 0.0  ;;  %v319_v13 = vmul.f32 0.2, %v407_v11  ;;  %vm311_vm2 = vcmp.ge.f32.partialorder %v415_v12, 0.0  ;;  %v327_v14 = vmul.f32 0.2, %v415_v12 }
  0xe3   :  { %v187_v15 = vpop.f32.mrb[1].mxu0  ;;  %v219_v16 = vpop.f32.mrb[1].mxu1 }
  0xe4   :  { %v335_v17 = vsel %vm303_vm1, %v407_v11, %v319_v13  ;;  %v343_v18 = vsel %vm311_vm2, %v415_v12, %v327_v14  ;;  %vm301_vm3 = vcmp.ge.f32.partialorder %v187_v15, 0.0  ;;  %v317_v19 = vmul.f32 0.2, %v187_v15  ;;  %v408_v20 = vpop.f32.mrb[2].mxu0  ;;  %v416_v21 = vpop.f32.mrb[2].mxu1 }
  0xe5   :  { %351 = vst [vmem:[%s544_s2 + $0x10] sm:$0xff] %v335_v17  ;;  %359 = vst [vmem:[%s544_s2 + $0x50] sm:$0xff] %v343_v18  ;;  %vm309_vm4 = vcmp.ge.f32.partialorder %v219_v16, 0.0  ;;  %v325_v22 = vmul.f32 0.2, %v219_v16  ;;  %vm304_vm5 = vcmp.ge.f32.partialorder %v408_v20, 0.0 }
  0xe6   :  { %v320_v23 = vmul.f32 0.2, %v408_v20  ;;  %v333_v24 = vsel %vm301_vm3, %v187_v15, %v317_v19  ;;  %vm312_vm6 = vcmp.ge.f32.partialorder %v416_v21, 0.0  ;;  %v328_v25 = vmul.f32 0.2, %v416_v21  ;;  %v190_v26 = vpop.f32.mrb[3].mxu0 }
  0xe7   :  { %v222_v27 = vpop.f32.mrb[3].mxu1  ;;  %349 = vst [vmem:[%s544_s2] sm:$0xff] %v333_v24  ;;  %v341_v28 = vsel %vm309_vm4, %v219_v16, %v325_v22  ;;  %vm302_vm7 = vcmp.ge.f32.partialorder %v190_v26, 0.0  ;;  %v318_v30 = vmul.f32 0.2, %v190_v26 }
  0xe8   :  { %v336_v29 = vsel %vm304_vm5, %v408_v20, %v320_v23  ;;  %357 = vst [vmem:[%s544_s2 + $0x40] sm:$0xff] %v341_v28  ;;  %v344_v31 = vsel %vm312_vm6, %v416_v21, %v328_v25  ;;  %vm310_vm8 = vcmp.ge.f32.partialorder %v222_v27, 0.0  ;;  %v326_v32 = vmul.f32 0.2, %v222_v27 }
  0xe9   :  { %352 = vst [vmem:[%s544_s2 + $0x18] sm:$0xff] %v336_v29  ;;  %360 = vst [vmem:[%s544_s2 + $0x58] sm:$0xff] %v344_v31  ;;  %v334_v33 = vsel %vm302_vm7, %v190_v26, %v318_v30  ;;  %v411_v34 = vpop.f32.mrb[4].mxu0  ;;  %v419_v35 = vpop.f32.mrb[4].mxu1 }
  0xea   :  { %350 = vst [vmem:[%s544_s2 + $0x8] sm:$0xff] %v334_v33  ;;  %v342_v36 = vsel %vm310_vm8, %v222_v27, %v326_v32  ;;  %vm307_vm9 = vcmp.ge.f32.partialorder %v411_v34, 0.0  ;;  %v323_v37 = vmul.f32 0.2, %v411_v34  ;;  %vm315_vm10 = vcmp.ge.f32.partialorder %v419_v35, 0.0  ;;  %v203_v38 = vpop.f32.mrb[5].mxu0 }
  0xeb   :  { %v235_v39 = vpop.f32.mrb[5].mxu1  ;;  %358 = vst [vmem:[%s544_s2 + $0x48] sm:$0xff] %v342_v36  ;;  %v331_v40 = vmul.f32 0.2, %v419_v35  ;;  %vm305_vm11 = vcmp.ge.f32.partialorder %v203_v38, 0.0  ;;  %v412_v44 = vpop.f32.mrb[6].mxu0 }
  0xec   :  { %v321_v41 = vmul.f32 0.2, %v203_v38  ;;  %vm313_vm12 = vcmp.ge.f32.partialorder %v235_v39, 0.0  ;;  %v339_v42 = vsel %vm307_vm9, %v411_v34, %v323_v37  ;;  %v329_v43 = vmul.f32 0.2, %v235_v39  ;;  %v420_v45 = vpop.f32.mrb[6].mxu1 }
  0xed   :  { %355 = vst [vmem:[%s544_s2 + $0x30] sm:$0xff] %v339_v42  ;;  %v347_v46 = vsel %vm315_vm10, %v419_v35, %v331_v40  ;;  %vm308_vm13 = vcmp.ge.f32.partialorder %v412_v44, 0.0  ;;  %v324_v48 = vmul.f32 0.2, %v412_v44  ;;  %v206_v49 = vpop.f32.mrb[7].mxu0  ;;  %v238_v50 = vpop.f32.mrb[7].mxu1 }
  0xee   :  { %v337_v47 = vsel %vm305_vm11, %v203_v38, %v321_v41  ;;  %363 = vst [vmem:[%s544_s2 + $0x70] sm:$0xff] %v347_v46  ;;  %v345_v51 = vsel %vm313_vm12, %v235_v39, %v329_v43  ;;  %vm316_vm14 = vcmp.ge.f32.partialorder %v420_v45, 0.0  ;;  %v332_v52 = vmul.f32 0.2, %v420_v45 }
  0xef   :  { %353 = vst [vmem:[%s544_s2 + $0x20] sm:$0xff] %v337_v47  ;;  %vm306_vm15 = vcmp.ge.f32.partialorder %v206_v49, 0.0  ;;  %361 = vst [vmem:[%s544_s2 + $0x60] sm:$0xff] %v345_v51  ;;  %v340_v53 = vsel %vm308_vm13, %v412_v44, %v324_v48  ;;  %v322_v54 = vmul.f32 0.2, %v206_v49  ;;  %vm314_vm0 = vcmp.ge.f32.partialorder %v238_v50, 0.0 }
  0xf0   :  { %v330_v55 = vmul.f32 0.2, %v238_v50  ;;  %356 = vst [vmem:[%s544_s2 + $0x38] sm:$0xff] %v340_v53  ;;  %v348_v56 = vsel %vm316_vm14, %v420_v45, %v332_v52 }
  0xf1   :  { %364 = vst [vmem:[%s544_s2 + $0x78] sm:$0xff] %v348_v56  ;;  %v338_v57 = vsel %vm306_vm15, %v206_v49, %v322_v54 }
  0xf2   :  { %v346_v58 = vsel %vm314_vm0, %v238_v50, %v330_v55  ;;  %354 = vst [vmem:[%s544_s2 + $0x28] sm:$0xff] %v338_v57 }
  0xf3   :  { %362 = vst [vmem:[%s544_s2 + $0x68] sm:$0xff] %v346_v58 }

// kernel: _lambda_.8
= control target key start
LH: loop header
LB: loop body
LE: loop exit
PB: predicated region body
PF: predicated region fallthrough
CT: control target
= control target key end

     0   :  { %v36_v6 = vlaneseq  ;;  %s155_s1 = inlined_call_operand.vmem [shape: f32[1,128], index: 1, kind: input, shape index: {}]   ;;  %s156_s2 = inlined_call_operand.vmem [shape: f32[1,128], index: 2, kind: input, shape index: {}]   ;;  %s157_s0 = inlined_call_operand.vmem [shape: f32[32,128], index: 0, kind: input, shape index: {}]   ;;  %s158_s3 = inlined_call_operand.vmem [shape: f32[1,128], index: 3, kind: input, shape index: {}]   ;;  %s159_s4 = inlined_call_operand.vmem [shape: f32[1,128], index: 4, kind: input, shape index: {}]   ;;  %s160_s5 = inlined_call_operand.vmem [shape: f32[32,128], index: 5, kind: output, shape index: {}]  }
   0x1   :  { %v20_v0 = vld [vmem:[%s155_s1] sm:$0x1]  ;;  %v32_v14 = vld [vmem:[%s157_s0 + $0x8] sm:$0xff]  ;;  %v33_v15 = vld [vmem:[%s157_s0 + $0x10] sm:$0xff] }
   0x2   :  { %v22_v1 = vld [vmem:[%s156_s2] sm:$0x1]  ;;  %v21_v2 = vmul.f32 0.03125, %v20_v0  ;;  %v37_v9 = vshrl.u32 %v36_v6, 7  ;;  %v34_v16 = vld [vmem:[%s157_s0 + $0x18] sm:$0xff] }
   0x3   :  { %v23_v3 = vmul.f32 0.03125, %v22_v1  ;;  %v29_v12 = vld [vmem:[%s158_s3] sm:$0x1] }
   0x4   :  { %v24_v4 = vmul.f32 %v21_v2, %v21_v2  ;;  %v38_v10 = vsub.s32 0, %v37_v9  ;;  %v31_v13 = vld [vmem:[%s157_s0] sm:$0xff] }
   0x5   :  { %v86_v24 = vld [vmem:[%s159_s4] ss:$0 sm:$0xff] }
   0x6   :  { %v25_v5 = vsub.f32 %v23_v3, %v24_v4  ;;  %v39_v11 = vrot.slane %v21_v2, %v38_v10 }
   0x8   :  { %v26_v7 = vmax.f32 %v25_v5, 0.0  ;;  %v41_v18 = vsub.f32 %v31_v13, %v39_v11  ;;  %v42_v20 = vsub.f32 %v32_v14, %v39_v11  ;;  %v43_v21 = vsub.f32 %v33_v15, %v39_v11 }
   0x9   :  { %v44_v22 = vsub.f32 %v34_v16, %v39_v11 }
   0xa   :  { %v27_v8 = vadd.f32 1e-05, %v26_v7 }
   0xc   :  { %87 = vrsqrt.f32 %v27_v8 }
  0x16   :  { %v88_v17 = vpop.eup %87 }
  0x17   :  { %v30_v19 = vmul.f32 %v88_v17, %v29_v12 }
  0x19   :  { %v49_v23 = vrot.slane %v30_v19, %v38_v10 }
  0x1b   :  { %v51_v25 = vmul.f32 %v49_v23, %v41_v18  ;;  %v52_v26 = vmul.f32 %v49_v23, %v42_v20  ;;  %v53_v27 = vmul.f32 %v49_v23, %v43_v21  ;;  %v54_v28 = vmul.f32 %v49_v23, %v44_v22 }
  0x1d   :  { %v62_v29 = vadd.f32 %v86_v24, %v51_v25  ;;  %v63_v30 = vadd.f32 %v86_v24, %v52_v26  ;;  %v64_v31 = vadd.f32 %v86_v24, %v53_v27  ;;  %v65_v32 = vadd.f32 %v86_v24, %v54_v28 }
  0x1f   :  { %vm66_vm0 = vcmp.ge.f32.partialorder %v62_v29, 0.0  ;;  %v70_v33 = vmul.f32 0.2, %v62_v29  ;;  %vm67_vm1 = vcmp.ge.f32.partialorder %v63_v30, 0.0  ;;  %v71_v34 = vmul.f32 0.2, %v63_v30 }
  0x20   :  { %vm68_vm2 = vcmp.ge.f32.partialorder %v64_v31, 0.0  ;;  %v72_v35 = vmul.f32 0.2, %v64_v31  ;;  %vm69_vm3 = vcmp.ge.f32.partialorder %v65_v32, 0.0  ;;  %v73_v36 = vmul.f32 0.2, %v65_v32 }
  0x21   :  { %v74_v37 = vsel %vm66_vm0, %v62_v29, %v70_v33  ;;  %v75_v38 = vsel %vm67_vm1, %v63_v30, %v71_v34 }
  0x22   :  { %78 = vst [vmem:[%s160_s5] sm:$0xff] %v74_v37  ;;  %79 = vst [vmem:[%s160_s5 + $0x8] sm:$0xff] %v75_v38  ;;  %v76_v39 = vsel %vm68_vm2, %v64_v31, %v72_v35  ;;  %v77_v40 = vsel %vm69_vm3, %v65_v32, %v73_v36 }
  0x23   :  { %80 = vst [vmem:[%s160_s5 + $0x10] sm:$0xff] %v76_v39  ;;  %81 = vst [vmem:[%s160_s5 + $0x18] sm:$0xff] %v77_v40 }

// kernel: _lambda_.7
= control target key start
LH: loop header
LB: loop body
LE: loop exit
PB: predicated region body
PF: predicated region fallthrough
CT: control target
= control target key end

     0   :  { %v381_v20 = vmov 0.0   ;;  %s497_s1 = inlined_call_operand.vmem [shape: bf16[256,128], index: 1, kind: input, shape index: {}]   ;;  %s498_s0 = inlined_call_operand.vmem [shape: bf16[32,256], index: 0, kind: input, shape index: {}]   ;;  %s499_s3 = inlined_call_operand.vmem [shape: f32[1,128], index: 3, kind: output, shape index: {1}]   ;;  %s500_s4 = inlined_call_operand.vmem [shape: f32[1,128], index: 4, kind: output, shape index: {2}]   ;;  %s501_s2 = inlined_call_operand.vmem [shape: f32[32,128], index: 2, kind: output, shape index: {0}]  }
   0x1   :  { %v359_v0 = vld [vmem:[%s497_s1 + $0x40] sm:$0xff]   ;;  %v361_v2 = vld [vmem:[%s497_s1 + $0x48] sm:$0xff]   ;;  %v363_v4 = vld [vmem:[%s497_s1 + $0x50] sm:$0xff]   ;;  %21 = vst [vmem:[%s499_s3] sm:$0x1] %v381_v20 }
   0x2   :  { %v360_v1 = vld [vmem:[%s497_s1] sm:$0xff]   ;;  %314 = vmatprep.subr.bf16.mxu0 %v359_v0  ;;  %342 = vmatprep.subr.bf16.mxu1 %v359_v0  ;;  %v362_v3 = vld [vmem:[%s497_s1 + $0x8] sm:$0xff]   ;;  %v364_v5 = vld [vmem:[%s497_s1 + $0x10] sm:$0xff]   ;;  %22 = vst [vmem:[%s500_s4] sm:$0x1] %v381_v20 }
   0x3   :  { %315 = vmatpush3.bf16.msra.mxu0 %v360_v1  ;;  %350 = vmatpush3.bf16.msra.mxu1 %v360_v1  ;;  %v365_v6 = vld [vmem:[%s497_s1 + $0x58] sm:$0xff]   ;;  %v367_v8 = vld [vmem:[%s497_s1 + $0x60] sm:$0xff]   ;;  %v369_v10 = vld [vmem:[%s497_s1 + $0x68] sm:$0xff]  }
   0x4   :  { %316 = vmatprep.subr.bf16.mxu0 %v361_v2  ;;  %343 = vmatprep.subr.bf16.mxu1 %v361_v2  ;;  %v366_v7 = vld [vmem:[%s497_s1 + $0x18] sm:$0xff]   ;;  %v368_v9 = vld [vmem:[%s497_s1 + $0x20] sm:$0xff]   ;;  %v370_v13 = vld [vmem:[%s497_s1 + $0x28] sm:$0xff]  }
   0x5   :  { %v377_v11 = vld [vmem:[%s498_s0 + $0x4] ss:$8 sps:$4 sm:$0xff]   ;;  %v380_v12 = vld [vmem:[%s498_s0 + $0x14] ss:$8 sps:$4 sm:$0xff]   ;;  %v375_v18 = vld [vmem:[%s498_s0] ss:$8 sps:$4 sm:$0xff]  }
   0x6   :  { %v371_v14 = vld [vmem:[%s497_s1 + $0x70] sm:$0xff]   ;;  %218 = vmatprep.mubr.bf16.mxu0 %v377_v11  ;;  %226 = vmatprep.mubr.bf16.mxu1 %v380_v12  ;;  %v373_v16 = vld [vmem:[%s497_s1 + $0x78] sm:$0xff]  }
   0x7   :  { %317 = vmatpush3.bf16.msra.mxu0 %v362_v3  ;;  %351 = vmatpush3.bf16.msra.mxu1 %v362_v3  ;;  %v372_v15 = vld [vmem:[%s497_s1 + $0x30] sm:$0xff]   ;;  %v374_v17 = vld [vmem:[%s497_s1 + $0x38] sm:$0xff]  }
   0x8   :  { %318 = vmatprep.subr.bf16.mxu0 %v363_v4  ;;  %344 = vmatprep.subr.bf16.mxu1 %v363_v4  ;;  %v378_v19 = vld [vmem:[%s498_s0 + $0x10] ss:$8 sps:$4 sm:$0xff]   ;;  %v254_v52 = vld [vmem:[%s499_s3] sm:$0x1] }
   0x9   :  { %v266_v55 = vld [vmem:[%s500_s4] sm:$0x1] }
   0xb   :  { %319 = vmatpush3.bf16.msra.mxu0 %v364_v5  ;;  %352 = vmatpush3.bf16.msra.mxu1 %v364_v5 }
   0xc   :  { %320 = vmatprep.subr.bf16.mxu0 %v365_v6  ;;  %345 = vmatprep.subr.bf16.mxu1 %v365_v6 }
   0xf   :  { %321 = vmatpush3.bf16.msra.mxu0 %v366_v7  ;;  %353 = vmatpush3.bf16.msra.mxu1 %v366_v7 }
  0x10   :  { %322 = vmatprep.subr.bf16.mxu0 %v367_v8  ;;  %346 = vmatprep.subr.bf16.mxu1 %v367_v8 }
  0x13   :  { %323 = vmatpush3.bf16.msra.mxu0 %v368_v9  ;;  %354 = vmatpush3.bf16.msra.mxu1 %v368_v9 }
  0x14   :  { %324 = vmatprep.subr.bf16.mxu0 %v369_v10  ;;  %347 = vmatprep.subr.bf16.mxu1 %v369_v10 }
  0x17   :  { %325 = vmatpush3.bf16.msra.mxu0 %v370_v13  ;;  %355 = vmatpush3.bf16.msra.mxu1 %v370_v13 }
  0x18   :  { %326 = vmatprep.subr.bf16.mxu0 %v371_v14  ;;  %348 = vmatprep.subr.bf16.mxu1 %v371_v14 }
  0x1b   :  { %327 = vmatpush3.bf16.msra.mxu0 %v372_v15  ;;  %356 = vmatpush3.bf16.msra.mxu1 %v372_v15 }
  0x1c   :  { %328 = vmatprep.subr.bf16.mxu0 %v373_v16  ;;  %349 = vmatprep.subr.bf16.mxu1 %v373_v16 }
  0x1f   :  { %329 = vmatpush3.bf16.msra.mxu0 %v374_v17  ;;  %357 = vmatpush3.bf16.msra.mxu1 %v374_v17 }
  0x22   :  { %219 = vmatmul.mubr.bf16.vlgmr.msra.gmra.mrb[0].mxu0 %v375_v18  ;;  %227 = vmatmul.mubr.bf16.vlgmr.msra.gmra.mrb[0].mxu1 %v378_v19 }
  0xf5   :  { %v330_v21 = vpop.f32.mrb[0].mxu0  ;;  %v336_v22 = vpop.f32.mrb[0].mxu1 }
  0xf6   :  { %v331_v23 = vpop.f32.mrb[1].mxu0  ;;  %v337_v24 = vpop.f32.mrb[1].mxu1 }
  0xf7   :  { %v332_v25 = vadd.f32 %v331_v23, %v330_v21  ;;  %v333_v26 = vpop.f32.mrb[2].mxu0  ;;  %v338_v27 = vadd.f32 %v337_v24, %v336_v22  ;;  %v339_v28 = vpop.f32.mrb[2].mxu1 }
  0xf8   :  { %v334_v29 = vpop.f32.mrb[3].mxu0  ;;  %v340_v30 = vpop.f32.mrb[3].mxu1 }
  0xf9   :  { %250 = vst [vmem:[%s501_s2] sm:$0xff] %v332_v25  ;;  %252 = vst [vmem:[%s501_s2 + $0x10] sm:$0xff] %v338_v27  ;;  %v335_v31 = vadd.f32 %v334_v29, %v333_v26  ;;  %v341_v32 = vadd.f32 %v340_v30, %v339_v28  ;;  %v267_v33 = vmul.f32 %v332_v25, %v332_v25 }
  0xfa   :  { %v269_v34 = vmul.f32 %v338_v27, %v338_v27 }
  0xfb   :  { %251 = vst [vmem:[%s501_s2 + $0x8] sm:$0xff] %v335_v31  ;;  %v255_v35 = vadd.f32 %v335_v31, %v332_v25  ;;  %v268_v36 = vmul.f32 %v335_v31, %v335_v31  ;;  %253 = vst [vmem:[%s501_s2 + $0x18] sm:$0xff] %v341_v32  ;;  %v270_v40 = vmul.f32 %v341_v32, %v341_v32 }
  0xfd   :  { %v271_v37 = vadd.f32 %v268_v36, %v267_v33  ;;  %v256_v38 = vadd.f32 %v338_v27, %v255_v35 }
  0xff   :  { %v257_v39 = vadd.f32 %v341_v32, %v256_v38  ;;  %v272_v41 = vadd.f32 %v271_v37, %v269_v34 }
 0x101   :  { %v258_v42 = vrot.slane %v257_v39, 4  ;;  %v273_v43 = vadd.f32 %v272_v41, %v270_v40 }
 0x103   :  { %v259_v44 = vadd.f32 %v258_v42, %v257_v39  ;;  %v274_v45 = vrot.slane %v273_v43, 4 }
 0x105   :  { %v260_v46 = vrot.slane %v259_v44, 2  ;;  %v275_v47 = vadd.f32 %v274_v45, %v273_v43 }
 0x107   :  { %v261_v48 = vadd.f32 %v260_v46, %v259_v44  ;;  %v276_v49 = vrot.slane %v275_v47, 2 }
 0x109   :  { %v262_v50 = vrot.slane %v261_v48, 1  ;;  %v277_v51 = vadd.f32 %v276_v49, %v275_v47 }
 0x10b   :  { %v263_v53 = vadd.f32 %v262_v50, %v261_v48  ;;  %v278_v54 = vrot.slane %v277_v51, 1 }
 0x10d   :  { %v264_v56 = vadd.f32 %v263_v53, %v254_v52  ;;  %v279_v57 = vadd.f32 %v278_v54, %v277_v51 }
 0x10f   :  { %265 = vst [vmem:[%s499_s3] sm:$0x1] %v264_v56  ;;  %v280_v58 = vadd.f32 %v279_v57, %v266_v55 }
 0x111   :  { %281 = vst [vmem:[%s500_s4] sm:$0x1] %v280_v58 }

// kernel: _lambda_.9
= control target key start
LH: loop header
LB: loop body
LE: loop exit
PB: predicated region body
PF: predicated region fallthrough
CT: control target
= control target key end

     0   :  { %s644_s1 = inlined_call_operand.vmem [shape: bf16[512,128], index: 1, kind: input, shape index: {}]   ;;  %s645_s0 = inlined_call_operand.vmem [shape: bf16[16,512], index: 0, kind: input, shape index: {}]   ;;  %s646_s2 = inlined_call_operand.vmem [shape: f32[16,128], index: 2, kind: output, shape index: {}]  }
   0x1   :  { %v477_v0 = vld [vmem:[%s644_s1 + $0x40] sm:$0xff]   ;;  %v481_v4 = vld [vmem:[%s644_s1 + $0x48] sm:$0xff]   ;;  %v485_v8 = vld [vmem:[%s644_s1 + $0x50] sm:$0xff]  }
   0x2   :  { %v478_v1 = vld [vmem:[%s644_s1 + $0xc0] sm:$0xff]   ;;  %433 = vmatprep.subr.bf16.mxu0 %v477_v0  ;;  %v482_v5 = vld [vmem:[%s644_s1 + $0xc8] sm:$0xff]   ;;  %v486_v9 = vld [vmem:[%s644_s1 + $0xd0] sm:$0xff]  }
   0x3   :  { %v479_v2 = vld [vmem:[%s644_s1] sm:$0xff]   ;;  %455 = vmatprep.subr.bf16.mxu1 %v478_v1  ;;  %v483_v6 = vld [vmem:[%s644_s1 + $0x8] sm:$0xff]   ;;  %v487_v10 = vld [vmem:[%s644_s1 + $0x10] sm:$0xff]  }
   0x4   :  { %v480_v3 = vld [vmem:[%s644_s1 + $0x80] sm:$0xff]   ;;  %434 = vmatpush3.bf16.msra.mxu0 %v479_v2  ;;  %v484_v7 = vld [vmem:[%s644_s1 + $0x88] sm:$0xff]   ;;  %v488_v11 = vld [vmem:[%s644_s1 + $0x90] sm:$0xff]  }
   0x5   :  { %456 = vmatpush3.bf16.msra.mxu1 %v480_v3  ;;  %435 = vmatprep.subr.bf16.mxu0 %v481_v4  ;;  %v489_v12 = vld [vmem:[%s644_s1 + $0x58] sm:$0xff]   ;;  %v493_v16 = vld [vmem:[%s644_s1 + $0x60] sm:$0xff]   ;;  %v497_v20 = vld [vmem:[%s644_s1 + $0x68] sm:$0xff]  }
   0x6   :  { %457 = vmatprep.subr.bf16.mxu1 %v482_v5  ;;  %v490_v13 = vld [vmem:[%s644_s1 + $0xd8] sm:$0xff]   ;;  %v494_v17 = vld [vmem:[%s644_s1 + $0xe0] sm:$0xff]   ;;  %v498_v21 = vld [vmem:[%s644_s1 + $0xe8] sm:$0xff]  }
   0x7   :  { %v491_v14 = vld [vmem:[%s644_s1 + $0x18] sm:$0xff]   ;;  %v495_v18 = vld [vmem:[%s644_s1 + $0x20] sm:$0xff]   ;;  %v499_v22 = vld [vmem:[%s644_s1 + $0x28] sm:$0xff]  }
   0x8   :  { %436 = vmatpush3.bf16.msra.mxu0 %v483_v6  ;;  %v492_v15 = vld [vmem:[%s644_s1 + $0x98] sm:$0xff]   ;;  %v496_v19 = vld [vmem:[%s644_s1 + $0xa0] sm:$0xff]   ;;  %v500_v23 = vld [vmem:[%s644_s1 + $0xa8] sm:$0xff]  }
   0x9   :  { %458 = vmatpush3.bf16.msra.mxu1 %v484_v7  ;;  %437 = vmatprep.subr.bf16.mxu0 %v485_v8  ;;  %v501_v24 = vld [vmem:[%s644_s1 + $0x70] sm:$0xff]   ;;  %v505_v28 = vld [vmem:[%s644_s1 + $0x78] sm:$0xff]  }
   0xa   :  { %459 = vmatprep.subr.bf16.mxu1 %v486_v9  ;;  %v502_v25 = vld [vmem:[%s644_s1 + $0xf0] sm:$0xff]   ;;  %v506_v29 = vld [vmem:[%s644_s1 + $0xf8] sm:$0xff]  }
   0xb   :  { %v503_v26 = vld [vmem:[%s644_s1 + $0x30] sm:$0xff]   ;;  %v507_v30 = vld [vmem:[%s644_s1 + $0x38] sm:$0xff]  }
   0xc   :  { %438 = vmatpush3.bf16.msra.mxu0 %v487_v10  ;;  %v504_v27 = vld [vmem:[%s644_s1 + $0xb0] sm:$0xff]   ;;  %v508_v31 = vld [vmem:[%s644_s1 + $0xb8] sm:$0xff]  }
   0xd   :  { %460 = vmatpush3.bf16.msra.mxu1 %v488_v11  ;;  %439 = vmatprep.subr.bf16.mxu0 %v489_v12  ;;  %v509_v32 = vld [vmem:[%s645_s0] ss:$16 sps:$4 sm:$0xff]   ;;  %v511_v33 = vld [vmem:[%s645_s0 + $0x4] ss:$16 sps:$4 sm:$0xff]   ;;  %v512_v34 = vld [vmem:[%s645_s0 + $0x8] ss:$16 sps:$4 sm:$0xff]  }
   0xe   :  { %461 = vmatprep.subr.bf16.mxu1 %v490_v13  ;;  %v514_v35 = vld [vmem:[%s645_s0 + $0xc] ss:$16 sps:$4 sm:$0xff]   ;;  %332 = vmatprep.mubr.bf16.mxu0 %v511_v33 }
   0xf   :  { %373 = vmatprep.mubr.bf16.mxu1 %v514_v35 }
  0x10   :  { %440 = vmatpush3.bf16.msra.mxu0 %v491_v14 }
  0x11   :  { %462 = vmatpush3.bf16.msra.mxu1 %v492_v15  ;;  %441 = vmatprep.subr.bf16.mxu0 %v493_v16 }
  0x12   :  { %463 = vmatprep.subr.bf16.mxu1 %v494_v17 }
  0x14   :  { %442 = vmatpush3.bf16.msra.mxu0 %v495_v18 }
  0x15   :  { %464 = vmatpush3.bf16.msra.mxu1 %v496_v19  ;;  %443 = vmatprep.subr.bf16.mxu0 %v497_v20 }
  0x16   :  { %465 = vmatprep.subr.bf16.mxu1 %v498_v21 }
  0x18   :  { %444 = vmatpush3.bf16.msra.mxu0 %v499_v22 }
  0x19   :  { %466 = vmatpush3.bf16.msra.mxu1 %v500_v23  ;;  %445 = vmatprep.subr.bf16.mxu0 %v501_v24 }
  0x1a   :  { %467 = vmatprep.subr.bf16.mxu1 %v502_v25 }
  0x1c   :  { %446 = vmatpush3.bf16.msra.mxu0 %v503_v26 }
  0x1d   :  { %468 = vmatpush3.bf16.msra.mxu1 %v504_v27  ;;  %447 = vmatprep.subr.bf16.mxu0 %v505_v28 }
  0x1e   :  { %469 = vmatprep.subr.bf16.mxu1 %v506_v29 }
  0x20   :  { %448 = vmatpush3.bf16.msra.mxu0 %v507_v30 }
  0x21   :  { %470 = vmatpush3.bf16.msra.mxu1 %v508_v31 }
  0x23   :  { %333 = vmatmul.mubr.bf16.vlgmr.msra.gmra.mrb[0].mxu0 %v509_v32 }
  0x24   :  { %374 = vmatmul.mubr.bf16.vlgmr.msra.gmra.mrb[0].mxu1 %v512_v34 }
  0xf6   :  { %v449_v36 = vpop.f32.mrb[0].mxu0 }
  0xf7   :  { %v471_v37 = vpop.f32.mrb[0].mxu1  ;;  %v450_v38 = vpop.f32.mrb[1].mxu0 }
  0xf8   :  { %v451_v39 = vadd.f32 %v450_v38, %v449_v36  ;;  %v472_v40 = vpop.f32.mrb[1].mxu1  ;;  %v452_v41 = vpop.f32.mrb[2].mxu0 }
  0xf9   :  { %v473_v42 = vadd.f32 %v472_v40, %v471_v37  ;;  %v474_v43 = vpop.f32.mrb[2].mxu1  ;;  %v453_v44 = vpop.f32.mrb[3].mxu0 }
  0xfa   :  { %v454_v45 = vadd.f32 %v453_v44, %v452_v41  ;;  %v475_v46 = vpop.f32.mrb[3].mxu1 }
  0xfb   :  { %v376_v47 = vadd.f32 %v473_v42, %v451_v39  ;;  %v476_v48 = vadd.f32 %v475_v46, %v474_v43 }
  0xfd   :  { %391 = vst [vmem:[%s646_s2] sm:$0xff] %v376_v47  ;;  %v379_v49 = vadd.f32 %v476_v48, %v454_v45 }
  0xff   :  { %392 = vst [vmem:[%s646_s2 + $0x8] sm:$0xff] %v379_v49 }

</bundles_post_ra>
